<compile_context>
chip_gen: v7x
topology: tpu7x:2x2x1
jax: 0.10.0
libtpu: 0.0.40
codegen_flags: <defaults>
</compile_context>

<pallas_src>
import jax
import jax.numpy as jnp
from jax.experimental import pallas as pl
from jax.experimental.pallas import tpu as pltpu


def _round_up(x, m):
    return ((x + m - 1) // m) * m


def encoder_kernel(x_ref, w1_ref, b1_ref, w2_ref, b2_ref, out_ref):
    # x_ref:   (12, TILE_B)  feature-major, batch on the 128-lane axis
    # w1_ref:  (8, 12)   b1_ref: (8, 1)
    # w2_ref:  (L, 8)    b2_ref: (L, 1)
    # out_ref: (L, TILE_B)
    h = jnp.dot(w1_ref[...], x_ref[...],
                preferred_element_type=jnp.float32) + b1_ref[...]
    h = jnp.maximum(h, 0.0)  # ReLU on the VPU
    out = jnp.dot(w2_ref[...], h,
                  preferred_element_type=jnp.float32) + b2_ref[...]
    out_ref[...] = out.astype(out_ref.dtype)


def encoder_forward(x, w1, b1, w2, b2, *, tile_b=2048):
    """x: (B, 12) f32, w1: (8, 12), b1: (8,), w2: (L, 8), b2: (L,) -> (B, L) f32.

    Weights/biases are in the native PyTorch nn.Linear layout (out, in)/(out,).
    """
    B, in_features = x.shape
    hidden = w1.shape[0]
    latent = w2.shape[0]

    # Tile size: multiple of 128 lanes, clamped to the (padded) batch.
    tile_b = max(128, min(_round_up(tile_b, 128), _round_up(B, 128)))
    padded_b = _round_up(B, tile_b)

    # Layout plumbing in the wrapper (not in the kernel): batch -> lane axis.
    xt = x.T                                   # (12, B)
    if padded_b != B:
        xt = jnp.pad(xt, ((0, 0), (0, padded_b - B)))
    b1c = b1.reshape(hidden, 1)
    b2c = b2.reshape(latent, 1)

    grid = (padded_b // tile_b,)

    flops = 2 * padded_b * (in_features * hidden + hidden * latent)
    bytes_accessed = 4 * (padded_b * (in_features + latent)
                          + w1.size + b1.size + w2.size + b2.size)

    out_t = pl.pallas_call(
        encoder_kernel,
        out_shape=jax.ShapeDtypeStruct((latent, padded_b), jnp.float32),
        grid_spec=pl.GridSpec(
            grid=grid,
            in_specs=[
                # x tile marches along the batch (lane) axis.
                pl.BlockSpec((in_features, tile_b), lambda i: (0, i)),
                # Weights / biases: constant block index -> VMEM-resident.
                pl.BlockSpec((hidden, in_features), lambda i: (0, 0)),
                pl.BlockSpec((hidden, 1), lambda i: (0, 0)),
                pl.BlockSpec((latent, hidden), lambda i: (0, 0)),
                pl.BlockSpec((latent, 1), lambda i: (0, 0)),
            ],
            out_specs=pl.BlockSpec((latent, tile_b), lambda i: (0, i)),
        ),
        compiler_params=pltpu.CompilerParams(
            dimension_semantics=("parallel",),
        ),
        cost_estimate=pl.CostEstimate(
            flops=flops, transcendentals=0, bytes_accessed=bytes_accessed),
    )(xt, w1, b1c, w2, b2c)

    # Back to the PyTorch (B, latent) layout, dropping padded batch columns.
    return out_t[:, :B].T


def init_params(key, latent_size):
    """Deterministic PyTorch-style (Kaiming-uniform-ish) init, PyTorch layout."""
    k1, k2, k3, k4 = jax.random.split(key, 4)
    in1, out1 = 12, 8
    in2, out2 = 8, latent_size
    bound1 = 1.0 / jnp.sqrt(in1)
    bound2 = 1.0 / jnp.sqrt(in2)
    # nn.Linear stores weight as (out_features, in_features).
    w1 = jax.random.uniform(k1, (out1, in1), jnp.float32, -bound1, bound1)
    b1 = jax.random.uniform(k2, (out1,), jnp.float32, -bound1, bound1)
    w2 = jax.random.uniform(k3, (out2, in2), jnp.float32, -bound2, bound2)
    b2 = jax.random.uniform(k4, (out2,), jnp.float32, -bound2, bound2)
    return w1, b1, w2, b2


if __name__ == "__main__":
    latent_size = 4
    batch = 8

    key = jax.random.PRNGKey(0)
    kx, kp = jax.random.split(key)
    x = jax.random.normal(kx, (batch, 12), jnp.float32)
    w1, b1, w2, b2 = init_params(kp, latent_size)

    out = encoder_forward(x, w1, b1, w2, b2)
    out = jax.block_until_ready(out)

    # Reference check in plain JAX (same math as the PyTorch forward).
    ref = jnp.maximum(x @ w1.T + b1, 0.0) @ w2.T + b2
    assert out.shape == (batch, latent_size)
    assert jnp.allclose(out, ref, atol=1e-5, rtol=1e-5)

    print("KERNEL_OK")
</pallas_src>

<mosaic_0001>
module attributes {stable_mosaic.version = 11 : i64} {
  func.func @encoder_kernel(%arg0: i32, %arg1: memref<12x128xf32, #tpu.memory_space<vmem>>, %arg2: memref<8x12xf32, #tpu.memory_space<vmem>>, %arg3: memref<8x1xf32, #tpu.memory_space<vmem>>, %arg4: memref<4x8xf32, #tpu.memory_space<vmem>>, %arg5: memref<4x1xf32, #tpu.memory_space<vmem>>, %arg6: memref<4x128xf32, #tpu.memory_space<vmem>>) attributes {dimension_semantics = [#tpu.dimension_semantics<parallel>], iteration_bounds = array<i64: 1>, scalar_prefetch = 0 : i64, scratch_operands = 0 : i64, tpu.core_type = #tpu.core_type<tc>, window_params = [{transform_indices = @transform_0, window_bounds = array<i64: 12, 128>}, {pipeline_mode = #tpu.pipeline_mode<synchronous>, transform_indices = @transform_1, window_bounds = array<i64: 8, 12>}, {pipeline_mode = #tpu.pipeline_mode<synchronous>, transform_indices = @transform_2, window_bounds = array<i64: 8, 1>}, {pipeline_mode = #tpu.pipeline_mode<synchronous>, transform_indices = @transform_3, window_bounds = array<i64: 4, 8>}, {pipeline_mode = #tpu.pipeline_mode<synchronous>, transform_indices = @transform_4, window_bounds = array<i64: 4, 1>}, {transform_indices = @transform_5, window_bounds = array<i64: 4, 128>}]} {
    %c0 = arith.constant 0 : index
    %c0_0 = arith.constant 0 : index
    %0 = vector.load %arg2[%c0, %c0_0] : memref<8x12xf32, #tpu.memory_space<vmem>>, vector<8x12xf32>
    %c0_1 = arith.constant 0 : index
    %c0_2 = arith.constant 0 : index
    %1 = vector.load %arg1[%c0_1, %c0_2] : memref<12x128xf32, #tpu.memory_space<vmem>>, vector<12x128xf32>
    %cst = arith.constant dense<0.000000e+00> : vector<8x128xf32>
    %2 = tpu.matmul %0, %1, %cst {dimension_numbers = #tpu.dot_dimension_numbers<[1], [0], [0], [1], [0, 0, 1, 1], [], []>} : vector<8x12xf32>, vector<12x128xf32>, vector<8x128xf32> -> vector<8x128xf32>
    %c0_3 = arith.constant 0 : index
    %c0_4 = arith.constant 0 : index
    %3 = vector.load %arg3[%c0_3, %c0_4] : memref<8x1xf32, #tpu.memory_space<vmem>>, vector<8x1xf32>
    %4 = vector.broadcast %3 : vector<8x1xf32> to vector<8x128xf32>
    %5 = arith.addf %2, %4 : vector<8x128xf32>
    %cst_5 = arith.constant 0.000000e+00 : f32
    %6 = vector.broadcast %cst_5 : f32 to vector<8x128xf32>
    %7 = arith.maximumf %5, %6 : vector<8x128xf32>
    %c0_6 = arith.constant 0 : index
    %c0_7 = arith.constant 0 : index
    %8 = vector.load %arg4[%c0_6, %c0_7] : memref<4x8xf32, #tpu.memory_space<vmem>>, vector<4x8xf32>
    %cst_8 = arith.constant dense<0.000000e+00> : vector<4x128xf32>
    %9 = tpu.matmul %8, %7, %cst_8 {dimension_numbers = #tpu.dot_dimension_numbers<[1], [0], [0], [1], [0, 0, 1, 1], [], []>} : vector<4x8xf32>, vector<8x128xf32>, vector<4x128xf32> -> vector<4x128xf32>
    %c0_9 = arith.constant 0 : index
    %c0_10 = arith.constant 0 : index
    %10 = vector.load %arg5[%c0_9, %c0_10] : memref<4x1xf32, #tpu.memory_space<vmem>>, vector<4x1xf32>
    %11 = vector.broadcast %10 : vector<4x1xf32> to vector<4x128xf32>
    %12 = arith.addf %9, %11 : vector<4x128xf32>
    %c0_11 = arith.constant 0 : index
    %c0_12 = arith.constant 0 : index
    %13 = vector.load %arg6[%c0_11, %c0_12] : memref<4x128xf32, #tpu.memory_space<vmem>>, vector<4x128xf32>
    tpu.vector_store %arg6[%c0_11, %c0_12], %12 {strides = array<i32>} : memref<4x128xf32, #tpu.memory_space<vmem>>, vector<4x128xf32>,
    return
  }
  func.func @transform_0(%arg0: i32) -> (i32, i32) {
    %c0_i32 = arith.constant 0 : i32
    %c0_i32_0 = arith.constant 0 : i32
    return %c0_i32, %arg0 : i32, i32
  }
  func.func @transform_1(%arg0: i32) -> (i32, i32) {
    %c0_i32 = arith.constant 0 : i32
    %c0_i32_0 = arith.constant 0 : i32
    %c0_i32_1 = arith.constant 0 : i32
    return %c0_i32, %c0_i32_0 : i32, i32
  }
  func.func @transform_2(%arg0: i32) -> (i32, i32) {
    %c0_i32 = arith.constant 0 : i32
    %c0_i32_0 = arith.constant 0 : i32
    %c0_i32_1 = arith.constant 0 : i32
    return %c0_i32, %c0_i32_0 : i32, i32
  }
  func.func @transform_3(%arg0: i32) -> (i32, i32) {
    %c0_i32 = arith.constant 0 : i32
    %c0_i32_0 = arith.constant 0 : i32
    %c0_i32_1 = arith.constant 0 : i32
    return %c0_i32, %c0_i32_0 : i32, i32
  }
  func.func @transform_4(%arg0: i32) -> (i32, i32) {
    %c0_i32 = arith.constant 0 : i32
    %c0_i32_0 = arith.constant 0 : i32
    %c0_i32_1 = arith.constant 0 : i32
    return %c0_i32, %c0_i32_0 : i32, i32
  }
  func.func @transform_5(%arg0: i32) -> (i32, i32) {
    %c0_i32 = arith.constant 0 : i32
    %c0_i32_0 = arith.constant 0 : i32
    return %c0_i32, %arg0 : i32, i32
  }
}

</mosaic_0001>

<bundles_post_ra>
// kernel: tpu_custom_call.1
= control target key start
LH: loop header
LB: loop body
LE: loop exit
PB: predicated region body
PF: predicated region fallthrough
CT: control target
= control target key end

     0   :  { %10 = vsyncpa [#allocation3], 0  ;;  %s377_s0 = inlined_call_operand.hbm [shape: f32[12,128], index: 0, kind: input, shape index: {}]   ;;  %s378_s1 = inlined_call_operand.vmem [shape: f32[8,12], index: 1, kind: input, shape index: {}]   ;;  %s379_s2 = inlined_call_operand.vmem [shape: f32[8,1], index: 2, kind: input, shape index: {}]   ;;  %s380_s3 = inlined_call_operand.vmem [shape: f32[4,8], index: 3, kind: input, shape index: {}]   ;;  %s381_s4 = inlined_call_operand.vmem [shape: f32[4,1], index: 4, kind: input, shape index: {}]   ;;  %s382_s5 = inlined_call_operand.hbm [shape: f32[4,128], index: 5, kind: output, shape index: {}]  }
   0x1   :  { %11 = vsyncpa [#allocation4], 0  ;;  %s302_s18 = smov [#allocation2]   ;;  %s254_s22 = scalar_lea.hbm %s377_s0, 256 }
   0x2   :  { %s17_s19 = sshll.u32 %s302_s18, 4  ;;  %p255_p0 = scmp.ne.s32.totalorder %s377_s0, %s254_s22  ;;  %s18_s19 = int_to_ptr.vmem [resolvable:$true] %s17_s19 }
   0x3   :  { %p258_p1 = scmp.lt.u32.totalorder %s254_s22, %s377_s0 }
   0x5   :  { %p260_p2 = pnand %p258_p1, %p255_p0 }
   0x7   :  { %263 = shalt.err (!%p260_p2)
}
   0x8   :  { %s264_s27 = scalar_lea.vmem %s18_s19, 256  ;;  %p269_p4 = scmp.lt.s32.totalorder %s18_s19, %s18_s19 }
   0x9   :  { %p265_p3 = scmp.ne.s32.totalorder %s18_s19, %s264_s27  ;;  %p270_p5 = scmp.lt.s32.totalorder %s264_s27, %s264_s27 }
   0xb   :  { %p271_p6 = por %p270_p5, %p269_p4 }
   0xd   :  { %p272_p7 = pnand %p271_p6, %p265_p3 }
   0xf   :  { %275 = shalt.err (!%p272_p7)
}
  0x10   :  { %s303_s28 = smov 128   ;;  %s304_s29 = smov 8  }
  0x11   :  { %23 = dma.hbm_to_vmem [thread:$0]  %s377_s0, 256, %s18_s19, [#allocation3], %s303_s28, %s303_s28, %s304_s29  }
  0x12   :  { %298 = dma.done.wait [#allocation3], 256  }
  0x13   :  { %299 = vsyncadd [#allocation3], 4294967040  ;;  %v305_v0 = vmov 0.0|0.0   ;;  %vm306_vm0 = vmmov 0   ;;  %v307_v1 = vmov 0.0   ;;  %v308_v2 = vmov 0  }
  0x14   :  { %240 = vmatprep.subr.bf16.mxu0 %v305_v0  ;;  %232 = vmatprep.mubr.msk.f32.mxu0 %vm306_vm0, %v307_v1  ;;  %vm48_vm1 = vcmask 1043456   ;;  %v36_v3 = vld [vmem:[#allocation2] sm:$0xff]  ;;  %v37_v4 = vld [vmem:[#allocation2 + $0x8] sm:$0xf]  ;;  %vm309_vm2 = vmmov 1   ;;  %vm44_vm4 = vcmask 97280  }
  0x15   :  { %253 = vset.pattern.permute.xlu0 %v308_v2  ;;  %235 = vmatprep.subr.mxu1 %v307_v1  ;;  %vm242_vm3 = vmpackc.low %vm48_vm1, %vm309_vm2  ;;  %v241_v5 = vpack.c.bf16 %v37_v4, %v36_v3  ;;  %v38_v6 = vld [vmem:[%s379_s2] sm:$0xff]  ;;  %vm130_vm5 = vcmask 64512  }
  0x16   :  { %237 = vmatprep.mubr.msk.f32.mxu1 %vm306_vm0, %v307_v1  ;;  %41 = vperm.xlu0 %253, %v38_v6   ;;  %v35_v7 = vld [vmem:[%s378_s1] sm:$0xff]  ;;  %s310_s1 = smov [#allocation5]  }
  0x17   :  { %243 = vmatpush3.bf16.msk.msra.mxu0 %vm242_vm3, %v241_v5  ;;  %v124_v8 = vld [vmem:[%s381_s4] sm:$0xf]  ;;  %s211_s13 = sshll.u32 %s310_s1, 4  ;;  %s212_s13 = int_to_ptr.vmem [resolvable:$true] %s211_s13 }
  0x18   :  { %v123_v14 = vld [vmem:[%s380_s3] sm:$0xf]  ;;  %s276_s4 = scalar_lea.vmem %s212_s13, 64  ;;  %p281_p9 = scmp.lt.s32.totalorder %s212_s13, %s212_s13 }
  0x19   :  { %p277_p8 = scmp.ne.s32.totalorder %s212_s13, %s276_s4  ;;  %p282_p10 = scmp.lt.s32.totalorder %s276_s4, %s276_s4 }
  0x1a   :  { %233 = vmatmul.mubr.msk.f32.vlgmr.msra.gmra.mrb[0].mxu0 %vm44_vm4, %v35_v7  ;;  %127 = vperm.xlu0 %253, %v124_v8  }
  0x1b   :  { %p283_p11 = por %p282_p10, %p281_p9 }
  0x1d   :  { %p284_p12 = pnand %p283_p11, %p277_p8 }
  0x95   :  { %v42_v9 = vpop.permute.xlu0 %41 }
  0x99   :  { %v128_v15 = vpop.permute.xlu0 %127 }
  0xed   :  { %v118_v10 = vpop.f32.mrb[0].mxu0 }
  0xee   :  { %v119_v11 = vadd.f32 %v118_v10, %v42_v9  ;;  %v234_v12 = vpop.f32.mrb[1].mxu0 }
  0xf0   :  { %v122_v13 = vmax.f32 %v119_v11, 0.0 }
  0xf2   :  { %236 = vmatpush3.msra.mxu1 %v122_v13 }
  0xf3   :  { %238 = vmatmul.mubr.msk.f32.vlgmr.msra.gmra.mrb[0].mxu1 %vm130_vm5, %v123_v14 }
 0x1c6   :  { %v200_v16 = vpop.f32.mrb[0].mxu1 }
 0x1c7   :  { %v201_v17 = vadd.f32 %v200_v16, %v128_v15  ;;  %v239_v18 = vpop.f32.mrb[1].mxu1 }
 0x1c9   :  { %204 = vst [vmem:[#allocation5] sm:$0xf] %v201_v17 }
 0x1ca   :  { %287 = shalt.err (!%p284_p12)
}
 0x1cb   :  { %s288_s15 = scalar_lea.hbm %s382_s5, 64 }
 0x1cc   :  { %p289_p13 = scmp.ne.s32.totalorder %s382_s5, %s288_s15  ;;  %p292_p0 = scmp.lt.u32.totalorder %s288_s15, %s382_s5 }
 0x1ce   :  { %p294_p1 = pnand %p292_p0, %p289_p13 }
 0x1d0   :  { %297 = shalt.err (!%p294_p1)
}
 0x1d1   :  { %214 = dma.vmem_to_hbm [thread:$0]  %s212_s13, 64, %s382_s5, [#allocation4]  }
 0x1d2   :  { %300 = dma.done.wait [#allocation4], 64  }
 0x1d3   :  { %301 = vsyncadd [#allocation4], 4294967232 }
 0x1d4   :  { %218 = vsyncpa [#allocation3], 1 }
 0x1d5   :  { %219 = vsyncpa [#allocation4], 1 }

</bundles_post_ra>
